<compile_context>
chip_gen: v7x
topology: tpu7x:2x2x1
jax: 0.10.0
libtpu: 0.0.40
codegen_flags: <defaults>
</compile_context>

<pallas_src>
import functools

import jax
import jax.numpy as jnp
from jax.experimental import pallas as pl
from jax.experimental.pallas import tpu as pltpu

_MAX_BLOCK_B = 1024


def _round_up(x, m):
    return (x + m - 1) // m * m


def _pick_block_b(batch):
    """Batch tile size: large (amortize ~0.35-0.6 us/step fixed cost),
    16-aligned (bf16 packs 16 sublanes/vreg), and -- when multiple tiles are
    needed -- an even tile count so the 'parallel' batch axis balances across
    v7x's two TensorCores."""
    if batch <= _MAX_BLOCK_B:
        # Single tile covering the whole batch (full-dim block is always legal).
        return batch
    block_b = _MAX_BLOCK_B
    n_tiles = -(-batch // block_b)
    if n_tiles % 2 == 1:
        n_tiles += 1
        block_b = _round_up(-(-batch // n_tiles), 16)
    return block_b


def _mlp_kernel(x_ref, w1_ref, b1_ref, w2_ref, b2_ref, o_ref):
    # Layer 1: bf16 MXU matmul, f32 accumulate; bias + ReLU stay f32 (VPU).
    h = jnp.dot(x_ref[...], w1_ref[...], preferred_element_type=jnp.float32)
    h = jnp.maximum(h + b1_ref[...], 0.0)
    # Layer 2: lane-dense (padded-N) bf16 MXU matmul, f32 accumulate + bias.
    out = jnp.dot(h.astype(w2_ref.dtype), w2_ref[...],
                  preferred_element_type=jnp.float32)
    o_ref[...] = (out + b2_ref[...]).astype(o_ref.dtype)


def prepare_mlp_params(w1, b1, w2, b2):
    """One-time parameter prep (hoisted out of the per-call forward):
    bf16 matmul operands, f32 biases, output dim padded to a lane-dense
    multiple of 128. Returns (params_tuple, out_size)."""
    _, out_size = w2.shape
    out_pad = _round_up(out_size, 128)
    w1b = jnp.asarray(w1, jnp.bfloat16)
    b1f = jnp.asarray(b1, jnp.float32).reshape(1, -1)
    w2p = jnp.pad(jnp.asarray(w2, jnp.bfloat16),
                  ((0, 0), (0, out_pad - out_size)))
    b2p = jnp.pad(jnp.asarray(b2, jnp.float32).reshape(1, -1),
                  ((0, 0), (0, out_pad - out_size)))
    return (w1b, b1f, w2p, b2p), out_size


@functools.partial(jax.jit, static_argnames=("out_size",))
def mlp_forward(x, params, out_size):
    """Fused 2-layer MLP forward. x: (B, in); params from prepare_mlp_params."""
    w1b, b1f, w2p, b2p = params
    batch, in_size = x.shape
    width = w1b.shape[1]
    out_pad = w2p.shape[1]

    block_b = _pick_block_b(batch)
    grid = (pl.cdiv(batch, block_b),)

    # Only the activation cast is per-call; x is NOT padded along batch --
    # the trailing partial block (if any) is masked by Pallas.
    xb = x.astype(jnp.bfloat16)

    out = pl.pallas_call(
        _mlp_kernel,
        out_shape=jax.ShapeDtypeStruct((batch, out_pad), jnp.float32),
        grid=grid,
        in_specs=[
            # x: tiled over the batch axis.
            pl.BlockSpec((block_b, in_size), lambda i: (i, 0)),
            # Weights / biases: whole-array blocks, constant index map ->
            # stay resident in VMEM across all batch tiles.
            pl.BlockSpec((in_size, width), lambda i: (0, 0)),
            pl.BlockSpec((1, width), lambda i: (0, 0)),
            pl.BlockSpec((width, out_pad), lambda i: (0, 0)),
            pl.BlockSpec((1, out_pad), lambda i: (0, 0)),
        ],
        out_specs=pl.BlockSpec((block_b, out_pad), lambda i: (i, 0)),
        compiler_params=pltpu.CompilerParams(
            dimension_semantics=("parallel",),      # megacore-shardable batch axis
            vmem_limit_bytes=32 * 1024 * 1024,      # >>10x headroom on all gens
        ),
    )(xb, w1b, b1f, w2p, b2p)

    return out[:, :out_size].astype(x.dtype)


def init_mlp_params(key, in_size, out_size, width=512, dtype=jnp.float32):
    """Kaiming-normal (relu gain) weights, zero biases — matches _init_weights."""
    k1, k2 = jax.random.split(key)
    std1 = (2.0 / in_size) ** 0.5   # gain sqrt(2) / sqrt(fan_in)
    std2 = (2.0 / width) ** 0.5
    w1 = (jax.random.normal(k1, (in_size, width)) * std1).astype(dtype)
    b1 = jnp.zeros((1, width), dtype)
    w2 = (jax.random.normal(k2, (width, out_size)) * std2).astype(dtype)
    b2 = jnp.zeros((1, out_size), dtype)
    return w1, b1, w2, b2


def _reference(x, w1, b1, w2, b2):
    """Plain-JAX reference mirroring the kernel's bf16-in / f32-accumulate math.

    NOTE: the bf16 MXU path deviates from the PyTorch f32 module by up to
    ~1e-2 relative for large fan-in; acceptable for RL value/policy heads.
    """
    h = jnp.dot(x.astype(jnp.bfloat16), w1.astype(jnp.bfloat16),
                preferred_element_type=jnp.float32)
    h = jnp.maximum(h + b1.astype(jnp.float32), 0.0)
    out = jnp.dot(h.astype(jnp.bfloat16), w2.astype(jnp.bfloat16),
                  preferred_element_type=jnp.float32)
    return (out + b2.astype(jnp.float32)).astype(x.dtype)


if __name__ == "__main__":
    key = jax.random.PRNGKey(0)
    k_x1, k_x2, k_x3, k_p = jax.random.split(key, 4)

    in_size, width, out_size = 16, 512, 4
    w1, b1, w2, b2 = init_mlp_params(k_p, in_size, out_size, width)
    params, out_sz = prepare_mlp_params(w1, b1, w2, b2)

    # Case 1: tiny batch (single tile).
    x_small = jax.random.normal(k_x1, (8, in_size), dtype=jnp.float32)
    out_small = mlp_forward(x_small, params, out_size=out_sz)
    jax.block_until_ready(out_small)
    ref_small = _reference(x_small, w1, b1, w2, b2)
    assert out_small.shape == (8, out_size)
    assert jnp.allclose(out_small, ref_small, atol=2e-3, rtol=2e-3)

    # Case 2: non-multiple-of-8 batch, single full-dim tile (no x padding).
    x_mid = jax.random.normal(k_x2, (300, in_size), dtype=jnp.float32)
    out_mid = mlp_forward(x_mid, params, out_size=out_sz)
    jax.block_until_ready(out_mid)
    ref_mid = _reference(x_mid, w1, b1, w2, b2)
    assert out_mid.shape == (300, out_size)
    assert jnp.allclose(out_mid, ref_mid, atol=2e-3, rtol=2e-3)

    # Case 3: multi-tile batch with a masked partial tail block and an even
    # tile count (exercises the v7x two-core-balanced path + Pallas masking).
    x_big = jax.random.normal(k_x3, (2500, in_size), dtype=jnp.float32)
    out_big = mlp_forward(x_big, params, out_size=out_sz)
    jax.block_until_ready(out_big)
    ref_big = _reference(x_big, w1, b1, w2, b2)
    assert out_big.shape == (2500, out_size)
    assert jnp.allclose(out_big, ref_big, atol=2e-3, rtol=2e-3)

    print("KERNEL_OK")
</pallas_src>

<mosaic_0001>
module attributes {stable_mosaic.version = 11 : i64} {
  func.func @_mlp_kernel(%arg0: i32, %arg1: memref<8x16xbf16, #tpu.memory_space<vmem>>, %arg2: memref<16x512xbf16, #tpu.memory_space<vmem>>, %arg3: memref<1x512xf32, #tpu.memory_space<vmem>>, %arg4: memref<512x128xbf16, #tpu.memory_space<vmem>>, %arg5: memref<1x128xf32, #tpu.memory_space<vmem>>, %arg6: memref<8x128xf32, #tpu.memory_space<vmem>>) attributes {dimension_semantics = [#tpu.dimension_semantics<parallel>], iteration_bounds = array<i64: 1>, scalar_prefetch = 0 : i64, scratch_operands = 0 : i64, tpu.core_type = #tpu.core_type<tc>, window_params = [{transform_indices = @transform_0, window_bounds = array<i64: 8, 16>}, {pipeline_mode = #tpu.pipeline_mode<synchronous>, transform_indices = @transform_1, window_bounds = array<i64: 16, 512>}, {pipeline_mode = #tpu.pipeline_mode<synchronous>, transform_indices = @transform_2, window_bounds = array<i64: 1, 512>}, {pipeline_mode = #tpu.pipeline_mode<synchronous>, transform_indices = @transform_3, window_bounds = array<i64: 512, 128>}, {pipeline_mode = #tpu.pipeline_mode<synchronous>, transform_indices = @transform_4, window_bounds = array<i64: 1, 128>}, {transform_indices = @transform_5, window_bounds = array<i64: 8, 128>}]} {
    %c0 = arith.constant 0 : index
    %c0_0 = arith.constant 0 : index
    %0 = vector.load %arg1[%c0, %c0_0] : memref<8x16xbf16, #tpu.memory_space<vmem>>, vector<8x16xbf16>
    %c0_1 = arith.constant 0 : index
    %c0_2 = arith.constant 0 : index
    %1 = vector.load %arg2[%c0_1, %c0_2] : memref<16x512xbf16, #tpu.memory_space<vmem>>, vector<16x512xbf16>
    %cst = arith.constant dense<0.000000e+00> : vector<8x512xf32>
    %2 = tpu.matmul %0, %1, %cst {dimension_numbers = #tpu.dot_dimension_numbers<[1], [0], [0], [1], [0, 0, 1, 1], [], []>} : vector<8x16xbf16>, vector<16x512xbf16>, vector<8x512xf32> -> vector<8x512xf32>
    %c0_3 = arith.constant 0 : index
    %c0_4 = arith.constant 0 : index
    %3 = vector.load %arg3[%c0_3, %c0_4] : memref<1x512xf32, #tpu.memory_space<vmem>>, vector<1x512xf32>
    %4 = vector.broadcast %3 : vector<1x512xf32> to vector<8x512xf32>
    %5 = arith.addf %2, %4 : vector<8x512xf32>
    %cst_5 = arith.constant 0.000000e+00 : f32
    %6 = vector.broadcast %cst_5 : f32 to vector<8x512xf32>
    %7 = arith.maximumf %5, %6 : vector<8x512xf32>
    %8 = arith.truncf %7 : vector<8x512xf32> to vector<8x512xbf16>
    %c0_6 = arith.constant 0 : index
    %c0_7 = arith.constant 0 : index
    %9 = vector.load %arg4[%c0_6, %c0_7] : memref<512x128xbf16, #tpu.memory_space<vmem>>, vector<512x128xbf16>
    %cst_8 = arith.constant dense<0.000000e+00> : vector<8x128xf32>
    %10 = tpu.matmul %8, %9, %cst_8 {dimension_numbers = #tpu.dot_dimension_numbers<[1], [0], [0], [1], [0, 0, 1, 1], [], []>} : vector<8x512xbf16>, vector<512x128xbf16>, vector<8x128xf32> -> vector<8x128xf32>
    %c0_9 = arith.constant 0 : index
    %c0_10 = arith.constant 0 : index
    %11 = vector.load %arg5[%c0_9, %c0_10] : memref<1x128xf32, #tpu.memory_space<vmem>>, vector<1x128xf32>
    %12 = vector.broadcast %11 : vector<1x128xf32> to vector<8x128xf32>
    %13 = arith.addf %10, %12 : vector<8x128xf32>
    %c0_11 = arith.constant 0 : index
    %c0_12 = arith.constant 0 : index
    %14 = vector.load %arg6[%c0_11, %c0_12] : memref<8x128xf32, #tpu.memory_space<vmem>>, vector<8x128xf32>
    tpu.vector_store %arg6[%c0_11, %c0_12], %13 {strides = array<i32>} : memref<8x128xf32, #tpu.memory_space<vmem>>, vector<8x128xf32>,
    return
  }
  func.func @transform_0(%arg0: i32) -> (i32, i32) {
    %c0_i32 = arith.constant 0 : i32
    %c0_i32_0 = arith.constant 0 : i32
    return %arg0, %c0_i32 : i32, i32
  }
  func.func @transform_1(%arg0: i32) -> (i32, i32) {
    %c0_i32 = arith.constant 0 : i32
    %c0_i32_0 = arith.constant 0 : i32
    %c0_i32_1 = arith.constant 0 : i32
    return %c0_i32, %c0_i32_0 : i32, i32
  }
  func.func @transform_2(%arg0: i32) -> (i32, i32) {
    %c0_i32 = arith.constant 0 : i32
    %c0_i32_0 = arith.constant 0 : i32
    %c0_i32_1 = arith.constant 0 : i32
    return %c0_i32, %c0_i32_0 : i32, i32
  }
  func.func @transform_3(%arg0: i32) -> (i32, i32) {
    %c0_i32 = arith.constant 0 : i32
    %c0_i32_0 = arith.constant 0 : i32
    %c0_i32_1 = arith.constant 0 : i32
    return %c0_i32, %c0_i32_0 : i32, i32
  }
  func.func @transform_4(%arg0: i32) -> (i32, i32) {
    %c0_i32 = arith.constant 0 : i32
    %c0_i32_0 = arith.constant 0 : i32
    %c0_i32_1 = arith.constant 0 : i32
    return %c0_i32, %c0_i32_0 : i32, i32
  }
  func.func @transform_5(%arg0: i32) -> (i32, i32) {
    %c0_i32 = arith.constant 0 : i32
    %c0_i32_0 = arith.constant 0 : i32
    return %arg0, %c0_i32 : i32, i32
  }
}

</mosaic_0001>

<bundles_post_ra>
// kernel: mlp_forward.1
= control target key start
LH: loop header
LB: loop body
LE: loop exit
PB: predicated region body
PF: predicated region fallthrough
CT: control target
= control target key end

     0   :  { %10 = vsyncpa [#allocation3], 0  ;;  %s789_s0 = inlined_call_operand.vmem [shape: bf16[8,16], index: 0, kind: input, shape index: {}]   ;;  %s790_s1 = inlined_call_operand.hbm [shape: bf16[16,512], index: 1, kind: input, shape index: {}]   ;;  %s791_s2 = inlined_call_operand.vmem [shape: f32[1,512], index: 2, kind: input, shape index: {}]   ;;  %s792_s3 = inlined_call_operand.hbm [shape: bf16[512,128], index: 3, kind: input, shape index: {}]   ;;  %s793_s4 = inlined_call_operand.vmem [shape: f32[1,128], index: 4, kind: input, shape index: {}]   ;;  %s794_s5 = inlined_call_operand.vmem [shape: f32[8,128], index: 5, kind: output, shape index: {}]  }
   0x1   :  { %11 = vsyncpa [#allocation5], 0  ;;  %s716_s18 = smov [#allocation2]   ;;  %s668_s22 = scalar_lea.hbm %s790_s1, 512 }
   0x2   :  { %s19_s19 = sshll.u32 %s716_s18, 4  ;;  %p669_p0 = scmp.ne.s32.totalorder %s790_s1, %s668_s22  ;;  %s20_s19 = int_to_ptr.vmem [resolvable:$true] %s19_s19 }
   0x3   :  { %p672_p1 = scmp.lt.u32.totalorder %s668_s22, %s790_s1 }
   0x5   :  { %p674_p2 = pnand %p672_p1, %p669_p0 }
   0x7   :  { %677 = shalt.err (!%p674_p2)
}
   0x8   :  { %s678_s27 = scalar_lea.vmem %s20_s19, 512  ;;  %p683_p4 = scmp.lt.s32.totalorder %s20_s19, %s20_s19 }
   0x9   :  { %p679_p3 = scmp.ne.s32.totalorder %s20_s19, %s678_s27  ;;  %p684_p5 = scmp.lt.s32.totalorder %s678_s27, %s678_s27 }
   0xb   :  { %p685_p6 = por %p684_p5, %p683_p4 }
   0xd   :  { %p686_p7 = pnand %p685_p6, %p679_p3 }
   0xf   :  { %689 = shalt.err (!%p686_p7)
}
  0x10   :  { %s717_s28 = smov 256   ;;  %s718_s29 = smov 16  }
  0x11   :  { %25 = dma.hbm_to_vmem [thread:$0]  %s790_s1, 512, %s20_s19, [#allocation3], %s717_s28, %s717_s28, %s718_s29  }
  0x12   :  { %s719_s7 = smov [#allocation4]   ;;  %s690_s11 = scalar_lea.hbm %s792_s3, 4096 }
  0x13   :  { %s33_s8 = sshll.u32 %s719_s7, 4  ;;  %p691_p8 = scmp.ne.s32.totalorder %s792_s3, %s690_s11  ;;  %s34_s8 = int_to_ptr.vmem [resolvable:$true] %s33_s8 }
  0x14   :  { %p694_p9 = scmp.lt.u32.totalorder %s690_s11, %s792_s3 }
  0x16   :  { %p696_p10 = pnand %p694_p9, %p691_p8 }
  0x18   :  { %699 = shalt.err (!%p696_p10)
}
  0x19   :  { %s700_s16 = scalar_lea.vmem %s34_s8, 4096  ;;  %p705_p12 = scmp.lt.s32.totalorder %s34_s8, %s34_s8 }
  0x1a   :  { %p701_p11 = scmp.ne.s32.totalorder %s34_s8, %s700_s16  ;;  %p706_p13 = scmp.lt.s32.totalorder %s700_s16, %s700_s16 }
  0x1c   :  { %p707_p0 = por %p706_p13, %p705_p12 }
  0x1e   :  { %p708_p1 = pnand %p707_p0, %p701_p11 }
  0x20   :  { %711 = shalt.err (!%p708_p1)
}
  0x21   :  { %s720_s1 = smov 64   ;;  %s721_s17 = smov 4  }
  0x22   :  { %39 = dma.hbm_to_vmem [thread:$0]  %s792_s3, 4096, %s34_s8, [#allocation5], %s720_s1, %s720_s1, %s721_s17  }
  0x23   :  { %712 = dma.done.wait [#allocation3], 512  }
  0x24   :  { %713 = vsyncadd [#allocation3], 4294966784 }
  0x25   :  { %714 = dma.done.wait [#allocation5], 4096  }
  0x26   :  { %715 = vsyncadd [#allocation5], 4294963200  ;;  %v722_v0 = vmov 0   ;;  %v630_v1 = vld [vmem:[#allocation2 + $0x4] ss:$16 sps:$4 sm:$0xff]   ;;  %vm96_vm0 = vcmask 130048   ;;  %v56_v38 = vlaneseq }
  0x27   :  { %132 = vmatprep.mubr.bf16.mxu0 %v722_v0  ;;  %173 = vmatprep.mubr.bf16.mxu1 %v722_v0  ;;  %v632_v2 = vld [vmem:[#allocation2 + $0xc] ss:$16 sps:$4 sm:$0xff]   ;;  %v634_v3 = vld [vmem:[#allocation2] ss:$16 sps:$4 sm:$0xff]   ;;  %v635_v4 = vld [vmem:[#allocation2 + $0x8] ss:$16 sps:$4 sm:$0xff]  }
  0x28   :  { %100 = vmatprep.subr.bf16.mxu0 %v630_v1  ;;  %v49_v5 = vld [vmem:[%s789_s0] sm:$0xf]  ;;  %141 = vmatprep.subr.bf16.mxu1 %v632_v2  ;;  %v640_v10 = vld [vmem:[#allocation4 + $0x48] sm:$0xff]   ;;  %v644_v14 = vld [vmem:[#allocation4 + $0x50] sm:$0xff]   ;;  %v57_v39 = vshrl.u32 %v56_v38, 7 }
  0x29   :  { %v636_v6 = vld [vmem:[#allocation4 + $0x40] sm:$0xff]   ;;  %101 = vmatpush1.bf16.msra.mxu0 %v634_v3  ;;  %142 = vmatpush1.bf16.msra.mxu1 %v635_v4  ;;  %v641_v11 = vld [vmem:[#allocation4 + $0xc8] sm:$0xff]   ;;  %v645_v15 = vld [vmem:[#allocation4 + $0xd0] sm:$0xff]  }
  0x2a   :  { %v637_v7 = vld [vmem:[#allocation4 + $0xc0] sm:$0xff]   ;;  %579 = vmatprep.subr.bf16.mxu0 %v636_v6  ;;  %v642_v12 = vld [vmem:[#allocation4 + $0x8] sm:$0xff]   ;;  %v646_v16 = vld [vmem:[#allocation4 + $0x10] sm:$0xff]   ;;  %v58_v40 = vsub.s32 0, %v57_v39  ;;  %v66_v41 = vsub.s32 2, %v57_v39  ;;  %v62_v43 = vsub.s32 1, %v57_v39 }
  0x2b   :  { %v638_v8 = vld [vmem:[#allocation4] sm:$0xff]   ;;  %601 = vmatprep.subr.bf16.mxu1 %v637_v7  ;;  %v643_v13 = vld [vmem:[#allocation4 + $0x88] sm:$0xff]   ;;  %v647_v17 = vld [vmem:[#allocation4 + $0x90] sm:$0xff]   ;;  %v70_v44 = vsub.s32 3, %v57_v39 }
  0x2c   :  { %v639_v9 = vld [vmem:[#allocation4 + $0x80] sm:$0xff]   ;;  %544 = vmatmul.mubr.msk.bf16.vlgmr.msra.gmra.mrb[0].mxu0 %vm96_vm0, %v49_v5  ;;  %545 = vmatmul.mubr.msk.bf16.vlgmr.msra.gmra.mrb[0].mxu1 %vm96_vm0, %v49_v5  ;;  %v648_v18 = vld [vmem:[#allocation4 + $0x58] sm:$0xff]   ;;  %v656_v26 = vld [vmem:[#allocation4 + $0x68] sm:$0xff]  }
  0x2d   :  { %580 = vmatpush3.bf16.msra.mxu0 %v638_v8  ;;  %602 = vmatpush3.bf16.msra.mxu1 %v639_v9  ;;  %v649_v19 = vld [vmem:[#allocation4 + $0xd8] sm:$0xff]   ;;  %v652_v22 = vld [vmem:[#allocation4 + $0x60] sm:$0xff]   ;;  %v657_v27 = vld [vmem:[#allocation4 + $0xe8] sm:$0xff]  }
  0x2e   :  { %581 = vmatprep.subr.bf16.mxu0 %v640_v10  ;;  %603 = vmatprep.subr.bf16.mxu1 %v641_v11  ;;  %v650_v20 = vld [vmem:[#allocation4 + $0x18] sm:$0xff]   ;;  %v653_v23 = vld [vmem:[#allocation4 + $0xe0] sm:$0xff]   ;;  %v658_v28 = vld [vmem:[#allocation4 + $0x28] sm:$0xff]  }
  0x2f   :  { %v651_v21 = vld [vmem:[#allocation4 + $0x98] sm:$0xff]   ;;  %v654_v24 = vld [vmem:[#allocation4 + $0x20] sm:$0xff]   ;;  %v659_v29 = vld [vmem:[#allocation4 + $0xa8] sm:$0xff]  }
  0x30   :  { %v655_v25 = vld [vmem:[#allocation4 + $0xa0] sm:$0xff]   ;;  %v660_v30 = vld [vmem:[#allocation4 + $0x70] sm:$0xff]   ;;  %v664_v34 = vld [vmem:[#allocation4 + $0x78] sm:$0xff]  }
  0x31   :  { %582 = vmatpush3.bf16.msra.mxu0 %v642_v12  ;;  %604 = vmatpush3.bf16.msra.mxu1 %v643_v13  ;;  %v661_v31 = vld [vmem:[#allocation4 + $0xf0] sm:$0xff]   ;;  %v665_v35 = vld [vmem:[#allocation4 + $0xf8] sm:$0xff]   ;;  %v54_v42 = vld [vmem:[%s791_s2] sm:$0xf] }
  0x32   :  { %583 = vmatprep.subr.bf16.mxu0 %v644_v14  ;;  %605 = vmatprep.subr.bf16.mxu1 %v645_v15  ;;  %v662_v32 = vld [vmem:[#allocation4 + $0x30] sm:$0xff]   ;;  %v666_v36 = vld [vmem:[#allocation4 + $0x38] sm:$0xff]   ;;  %v59_v45 = vrot.slane %v54_v42, %v58_v40  ;;  %v67_v46 = vrot.slane %v54_v42, %v66_v41  ;;  %v63_v47 = vrot.slane %v54_v42, %v62_v43  ;;  %v546_v7 = vld [vmem:[%s793_s4] ss:$0 sm:$0xff] }
  0x33   :  { %v663_v33 = vld [vmem:[#allocation4 + $0xb0] sm:$0xff]   ;;  %v667_v37 = vld [vmem:[#allocation4 + $0xb8] sm:$0xff]   ;;  %v71_v48 = vrot.slane %v54_v42, %v70_v44 }
  0x35   :  { %584 = vmatpush3.bf16.msra.mxu0 %v646_v16  ;;  %606 = vmatpush3.bf16.msra.mxu1 %v647_v17 }
  0x36   :  { %585 = vmatprep.subr.bf16.mxu0 %v648_v18  ;;  %607 = vmatprep.subr.bf16.mxu1 %v649_v19 }
  0x39   :  { %586 = vmatpush3.bf16.msra.mxu0 %v650_v20  ;;  %608 = vmatpush3.bf16.msra.mxu1 %v651_v21 }
  0x3a   :  { %587 = vmatprep.subr.bf16.mxu0 %v652_v22  ;;  %609 = vmatprep.subr.bf16.mxu1 %v653_v23 }
  0x3d   :  { %588 = vmatpush3.bf16.msra.mxu0 %v654_v24  ;;  %610 = vmatpush3.bf16.msra.mxu1 %v655_v25 }
  0x3e   :  { %589 = vmatprep.subr.bf16.mxu0 %v656_v26  ;;  %611 = vmatprep.subr.bf16.mxu1 %v657_v27 }
  0x41   :  { %590 = vmatpush3.bf16.msra.mxu0 %v658_v28  ;;  %612 = vmatpush3.bf16.msra.mxu1 %v659_v29 }
  0x42   :  { %591 = vmatprep.subr.bf16.mxu0 %v660_v30  ;;  %613 = vmatprep.subr.bf16.mxu1 %v661_v31 }
  0x45   :  { %592 = vmatpush3.bf16.msra.mxu0 %v662_v32  ;;  %614 = vmatpush3.bf16.msra.mxu1 %v663_v33 }
  0x46   :  { %593 = vmatprep.subr.bf16.mxu0 %v664_v34  ;;  %615 = vmatprep.subr.bf16.mxu1 %v665_v35 }
  0x49   :  { %594 = vmatpush3.bf16.msra.mxu0 %v666_v36  ;;  %616 = vmatpush3.bf16.msra.mxu1 %v667_v37 }
  0xff   :  { %v134_v49 = vpop.f32.mrb[0].mxu0  ;;  %v175_v50 = vpop.f32.mrb[0].mxu1 }
 0x100   :  { %v135_v51 = vadd.f32 %v134_v49, %v59_v45  ;;  %v176_v52 = vadd.f32 %v175_v50, %v67_v46  ;;  %v136_v53 = vpop.f32.mrb[1].mxu0  ;;  %v177_v54 = vpop.f32.mrb[1].mxu1 }
 0x101   :  { %v137_v55 = vadd.f32 %v136_v53, %v63_v47  ;;  %v178_v56 = vadd.f32 %v177_v54, %v71_v48  ;;  %v138_v57 = vpop.f32.mrb[2].mxu0  ;;  %v179_v58 = vpop.f32.mrb[2].mxu1 }
 0x102   :  { %v182_v59 = vmax.f32 %v135_v51, 0.0  ;;  %v184_v60 = vmax.f32 %v176_v52, 0.0  ;;  %v139_v61 = vpop.f32.mrb[3].mxu0  ;;  %v180_v62 = vpop.f32.mrb[3].mxu1 }
 0x103   :  { %v183_v63 = vmax.f32 %v137_v55, 0.0  ;;  %v185_v0 = vmax.f32 %v178_v56, 0.0 }
 0x104   :  { %v188_v1 = vpack.c.bf16 %v184_v60, %v184_v60  ;;  %v186_v4 = vpack.c.bf16 %v182_v59, %v182_v59 }
 0x105   :  { %v187_v2 = vpack.c.bf16 %v183_v63, %v183_v63  ;;  %v189_v3 = vpack.c.bf16 %v185_v0, %v185_v0 }
 0x107   :  { %485 = vmatprep.mubr.bf16.mxu0 %v187_v2  ;;  %525 = vmatprep.mubr.bf16.mxu1 %v189_v3 }
 0x108   :  { %486 = vmatmul.mubr.bf16.vlgmr.msra.gmra.mrb[4].mxu0 %v186_v4  ;;  %526 = vmatmul.mubr.bf16.vlgmr.msra.gmra.mrb[4].mxu1 %v188_v1 }
 0x1db   :  { %v595_v5 = vpop.f32.mrb[4].mxu0  ;;  %v617_v6 = vpop.f32.mrb[4].mxu1 }
 0x1dc   :  { %v596_v8 = vpop.f32.mrb[5].mxu0  ;;  %v618_v9 = vpop.f32.mrb[5].mxu1 }
 0x1dd   :  { %v597_v10 = vadd.f32 %v596_v8, %v595_v5  ;;  %v619_v11 = vadd.f32 %v618_v9, %v617_v6  ;;  %v598_v12 = vpop.f32.mrb[6].mxu0  ;;  %v620_v13 = vpop.f32.mrb[6].mxu1 }
 0x1de   :  { %v599_v14 = vpop.f32.mrb[7].mxu0  ;;  %v621_v15 = vpop.f32.mrb[7].mxu1 }
 0x1df   :  { %v488_v16 = vadd.f32 %v597_v10, %v546_v7 }
 0x1e1   :  { %v528_v17 = vadd.f32 %v619_v11, %v488_v16 }
 0x1e3   :  { %533 = vst [vmem:[%s794_s5] sm:$0xff] %v528_v17 }
 0x1e4   :  { %538 = vsyncpa [#allocation3], 1 }
 0x1e5   :  { %539 = vsyncpa [#allocation5], 1 }

</bundles_post_ra>
